<compile_context>
chip_gen: v6e
topology: v6e:2x2x1
jax: 0.10.0
libtpu: 0.0.40
codegen_flags: <defaults>
</compile_context>

<pallas_src>
import functools

import jax
import jax.numpy as jnp
from jax import lax
from jax.experimental import pallas as pl
from jax.experimental.pallas import tpu as pltpu

LEAKY_SLOPE = 0.01                 # torch.nn.LeakyReLU default negative_slope
COMPUTE_DTYPE = jnp.bfloat16       # MXU operand dtype (f32 accumulation)
ADJ_DTYPE = jnp.bfloat16           # exact for 0/1 adjacency entries
LANE = 128
VMEM_LIMIT_BYTES = 48 * 1024 * 1024   # <= v7x 64 MiB physical; plenty on v5e/v6e


# ----------------------------------------------------------------------------
# Padding / tiling helpers
# ----------------------------------------------------------------------------
def _round_up(x, m):
    return ((x + m - 1) // m) * m


def _pad_and_tile(n, target):
    """Pad a row dimension (lane-dense, multiples of 128) and pick its tile.

    Large dims tile with `target`.  Small dims pad to a multiple of 128 and,
    when >= 256, split into two tiles so the parallel grid axis has >= 2 steps
    (both v7x TensorCores stay busy).
    """
    assert target % LANE == 0, "row tile target must be a multiple of 128"
    if n >= target:
        return _round_up(n, target), target
    n_p = _round_up(n, LANE)
    if n_p >= 2 * LANE:
        n_p = _round_up(n_p, 2 * LANE)
        return n_p, n_p // 2
    return n_p, n_p


def _pad2(x, rows, cols):
    return jnp.pad(x, ((0, rows - x.shape[0]), (0, cols - x.shape[1])))


# ----------------------------------------------------------------------------
# Adjacency preparation: hoisted out of the per-call forward
# ----------------------------------------------------------------------------
def prepare_adjacency(adj_ui, *, row_tile=512):
    """Pad + cast the dense per-edge-type adjacency ONCE (reused every call)."""
    R, nU, nI = adj_ui.shape
    nU_p, TU = _pad_and_tile(nU, row_tile)
    nI_p, TI = _pad_and_tile(nI, row_tile)
    adj_p = jnp.pad(adj_ui, ((0, 0), (0, nU_p - nU), (0, nI_p - nI))
                    ).astype(ADJ_DTYPE)
    return dict(adj_p=adj_p, n_users=nU, n_items=nI,
                n_users_pad=nU_p, n_items_pad=nI_p,
                tile_users=TU, tile_items=TI)


# ----------------------------------------------------------------------------
# Kernel 1: per-edge-type projection  XW[r] = X @ W[r]   (bf16 out, f32 acc)
# ----------------------------------------------------------------------------
def _xw_kernel(x_ref, w_ref, o_ref):
    o_ref[...] = jnp.dot(
        x_ref[...].astype(COMPUTE_DTYPE), w_ref[...],
        preferred_element_type=jnp.float32).astype(o_ref.dtype)


def xw_per_type(x_p, w, *, tile_src):
    """x_p: (n_src_pad, d_in_p) already padded, w: (R, d_in, d_out)
    -> (R, n_src_pad, d_out_p) bf16."""
    n_src_pad, d_in_p = x_p.shape
    R, d_in, d_out = w.shape
    d_out_p = _round_up(d_out, LANE)
    w_p = jnp.pad(w, ((0, 0), (0, d_in_p - d_in), (0, d_out_p - d_out))
                  ).astype(COMPUTE_DTYPE)
    return pl.pallas_call(
        _xw_kernel,
        out_shape=jax.ShapeDtypeStruct((R, n_src_pad, d_out_p), COMPUTE_DTYPE),
        grid_spec=pltpu.PrefetchScalarGridSpec(
            num_scalar_prefetch=0,
            grid=(n_src_pad // tile_src, R),
            in_specs=[
                pl.BlockSpec((tile_src, d_in_p), lambda s, r: (s, 0)),
                pl.BlockSpec((None, d_in_p, d_out_p), lambda s, r: (r, 0, 0)),
            ],
            out_specs=pl.BlockSpec((None, tile_src, d_out_p),
                                   lambda s, r: (r, s, 0)),
        ),
        compiler_params=pltpu.CompilerParams(
            dimension_semantics=("parallel", "parallel"),
            vmem_limit_bytes=VMEM_LIMIT_BYTES),
    )(x_p, w_p)


# ----------------------------------------------------------------------------
# Kernel 2: GCMC aggregation  out = leaky( sum_r A_r(^T) @ XW_r )
#   transpose_adj=False: users as dst, out[m,:] += A[m,k] @ XW[k,:]
#   transpose_adj=True : items as dst, out[m,:] += A[k,m]^T @ XW[k,:]
#     (contraction on dim 0 of both tiles; no transposed operands in HBM)
# f32 accumulation in VMEM scratch, bf16 lane-dense output store at finalize.
# ----------------------------------------------------------------------------
def _gcmc_agg_kernel(a_ref, xw_ref, o_ref, acc_ref, *, transpose_adj):
    r = pl.program_id(1)
    k = pl.program_id(2)

    @pl.when(jnp.logical_and(r == 0, k == 0))
    def _():
        acc_ref[...] = jnp.zeros_like(acc_ref)

    if transpose_adj:
        part = lax.dot_general(a_ref[...], xw_ref[...],
                               dimension_numbers=(((0,), (0,)), ((), ())),
                               preferred_element_type=jnp.float32)
    else:
        part = jnp.dot(a_ref[...], xw_ref[...],
                       preferred_element_type=jnp.float32)
    acc_ref[...] += part

    @pl.when(jnp.logical_and(r == pl.num_programs(1) - 1,
                             k == pl.num_programs(2) - 1))
    def _():
        acc = acc_ref[...]
        o_ref[...] = jnp.where(acc >= 0, acc, LEAKY_SLOPE * acc
                               ).astype(o_ref.dtype)


def gcmc_aggregate_users(adj_p, xw_items, *, tm_u, tk_i):
    """adj_p: (R, nU_p, nI_p) bf16, xw_items: (R, nI_p, d_out_p) bf16
    -> (nU_p, d_out_p) bf16 (padded rows stay zero)."""
    R, nU_p, nI_p = adj_p.shape
    d_out_p = xw_items.shape[2]
    return pl.pallas_call(
        functools.partial(_gcmc_agg_kernel, transpose_adj=False),
        out_shape=jax.ShapeDtypeStruct((nU_p, d_out_p), COMPUTE_DTYPE),
        grid_spec=pltpu.PrefetchScalarGridSpec(
            num_scalar_prefetch=0,
            grid=(nU_p // tm_u, R, nI_p // tk_i),
            in_specs=[
                pl.BlockSpec((None, tm_u, tk_i), lambda m, r, k: (r, m, k)),
                pl.BlockSpec((None, tk_i, d_out_p), lambda m, r, k: (r, k, 0)),
            ],
            out_specs=pl.BlockSpec((tm_u, d_out_p), lambda m, r, k: (m, 0)),
            scratch_shapes=[pltpu.VMEM((tm_u, d_out_p), jnp.float32)],
        ),
        compiler_params=pltpu.CompilerParams(
            dimension_semantics=("parallel", "arbitrary", "arbitrary"),
            vmem_limit_bytes=VMEM_LIMIT_BYTES),
    )(adj_p, xw_items)


def gcmc_aggregate_items(adj_p, xw_users, *, tm_i, tk_u):
    """adj_p: (R, nU_p, nI_p) bf16, xw_users: (R, nU_p, d_out_p) bf16
    -> (nI_p, d_out_p) bf16 (padded rows stay zero). No A^T / XW^T in HBM."""
    R, nU_p, nI_p = adj_p.shape
    d_out_p = xw_users.shape[2]
    return pl.pallas_call(
        functools.partial(_gcmc_agg_kernel, transpose_adj=True),
        out_shape=jax.ShapeDtypeStruct((nI_p, d_out_p), COMPUTE_DTYPE),
        grid_spec=pltpu.PrefetchScalarGridSpec(
            num_scalar_prefetch=0,
            grid=(nI_p // tm_i, R, nU_p // tk_u),
            in_specs=[
                pl.BlockSpec((None, tk_u, tm_i), lambda m, r, k: (r, k, m)),
                pl.BlockSpec((None, tk_u, d_out_p), lambda m, r, k: (r, k, 0)),
            ],
            out_specs=pl.BlockSpec((tm_i, d_out_p), lambda m, r, k: (m, 0)),
            scratch_shapes=[pltpu.VMEM((tm_i, d_out_p), jnp.float32)],
        ),
        compiler_params=pltpu.CompilerParams(
            dimension_semantics=("parallel", "arbitrary", "arbitrary"),
            vmem_limit_bytes=VMEM_LIMIT_BYTES),
    )(adj_p, xw_users)


# ----------------------------------------------------------------------------
# Kernel 3: row-tiled linear  y = x @ W + b  (+ optional leaky)
# ----------------------------------------------------------------------------
def _linear_kernel(x_ref, w_ref, b_ref, o_ref, *, leaky):
    y = jnp.dot(x_ref[...].astype(COMPUTE_DTYPE), w_ref[...],
                preferred_element_type=jnp.float32) + b_ref[...]
    if leaky:
        y = jnp.where(y >= 0, y, LEAKY_SLOPE * y)
    o_ref[...] = y.astype(o_ref.dtype)


def linear(x, w, b, *, leaky=False, row_tile=512):
    n, d_in = x.shape
    d_out = w.shape[1]
    n_p, tm = _pad_and_tile(n, row_tile)
    d_in_p = _round_up(d_in, LANE)
    d_out_p = _round_up(d_out, LANE)
    x_p = _pad2(x, n_p, d_in_p)
    w_p = _pad2(w, d_in_p, d_out_p).astype(COMPUTE_DTYPE)
    b_p = _pad2(b, 1, d_out_p)
    out = pl.pallas_call(
        functools.partial(_linear_kernel, leaky=leaky),
        out_shape=jax.ShapeDtypeStruct((n_p, d_out_p), jnp.float32),
        grid_spec=pltpu.PrefetchScalarGridSpec(
            num_scalar_prefetch=0,
            grid=(n_p // tm,),
            in_specs=[
                pl.BlockSpec((tm, d_in_p), lambda m: (m, 0)),
                pl.BlockSpec((d_in_p, d_out_p), lambda m: (0, 0)),
                pl.BlockSpec((1, d_out_p), lambda m: (0, 0)),
            ],
            out_specs=pl.BlockSpec((tm, d_out_p), lambda m: (m, 0)),
        ),
        compiler_params=pltpu.CompilerParams(
            dimension_semantics=("parallel",),
            vmem_limit_bytes=VMEM_LIMIT_BYTES),
    )(x_p, w_p, b_p)
    return out[:n, :d_out]


# ----------------------------------------------------------------------------
# Kernel 4: fused decoder layer  y = leaky(x @ W1 + b1) @ W2 + b2
# ----------------------------------------------------------------------------
def _decoder_kernel(x_ref, w1_ref, b1_ref, w2_ref, b2_ref, o_ref):
    h = jnp.dot(x_ref[...].astype(COMPUTE_DTYPE), w1_ref[...],
                preferred_element_type=jnp.float32) + b1_ref[...]
    h = jnp.where(h >= 0, h, LEAKY_SLOPE * h)
    y = jnp.dot(h.astype(COMPUTE_DTYPE), w2_ref[...],
                preferred_element_type=jnp.float32) + b2_ref[...]
    o_ref[...] = y.astype(o_ref.dtype)


def decoder_layer(x, w1, b1, w2, b2, *, row_tile=512):
    n, d_in = x.shape
    d_hid, d_out = w1.shape[1], w2.shape[1]
    n_p, tm = _pad_and_tile(n, row_tile)
    d_in_p = _round_up(d_in, LANE)
    d_hid_p = _round_up(d_hid, LANE)
    d_out_p = _round_up(d_out, LANE)
    x_p = _pad2(x, n_p, d_in_p)
    w1_p = _pad2(w1, d_in_p, d_hid_p).astype(COMPUTE_DTYPE)
    b1_p = _pad2(b1, 1, d_hid_p)
    w2_p = _pad2(w2, d_hid_p, d_out_p).astype(COMPUTE_DTYPE)
    b2_p = _pad2(b2, 1, d_out_p)
    out = pl.pallas_call(
        _decoder_kernel,
        out_shape=jax.ShapeDtypeStruct((n_p, d_out_p), jnp.float32),
        grid_spec=pltpu.PrefetchScalarGridSpec(
            num_scalar_prefetch=0,
            grid=(n_p // tm,),
            in_specs=[
                pl.BlockSpec((tm, d_in_p), lambda m: (m, 0)),
                pl.BlockSpec((d_in_p, d_hid_p), lambda m: (0, 0)),
                pl.BlockSpec((1, d_hid_p), lambda m: (0, 0)),
                pl.BlockSpec((d_hid_p, d_out_p), lambda m: (0, 0)),
                pl.BlockSpec((1, d_out_p), lambda m: (0, 0)),
            ],
            out_specs=pl.BlockSpec((tm, d_out_p), lambda m: (m, 0)),
        ),
        compiler_params=pltpu.CompilerParams(
            dimension_semantics=("parallel",),
            vmem_limit_bytes=VMEM_LIMIT_BYTES),
    )(x_p, w1_p, b1_p, w2_p, b2_p)
    return out[:n, :d_out]


# ----------------------------------------------------------------------------
# Parameter construction (deterministic, xavier-normal-like)
# ----------------------------------------------------------------------------
def xavier(key, shape):
    fan_in, fan_out = shape[-2], shape[-1]
    std = (2.0 / (fan_in + fan_out)) ** 0.5
    return (std * jax.random.normal(key, shape)).astype(jnp.float32)


def build_params(key, *, n_layers_en, n_layers_de, n_edge_types,
                 in_feats_dim, hidden_feats_dim, out_feats_dim):
    keys = iter(jax.random.split(key, 64))
    params = {"enc_layers": [], "dec_layers": []}

    d_in = in_feats_dim
    for _ in range(n_layers_en):
        params["enc_layers"].append({
            "W_item": xavier(next(keys), (n_edge_types, d_in, hidden_feats_dim)),
            "W_user": xavier(next(keys), (n_edge_types, d_in, hidden_feats_dim)),
        })
        d_in = hidden_feats_dim

    params["W_h"] = xavier(next(keys), (hidden_feats_dim, out_feats_dim))
    params["b_h"] = jnp.zeros((1, out_feats_dim), jnp.float32)

    d_in = out_feats_dim
    hid = in_feats_dim      # hidden_feats_dim defaults to org_feats_dim
    org = in_feats_dim
    for _ in range(n_layers_de):
        params["dec_layers"].append({
            "W1": xavier(next(keys), (d_in, hid)),
            "b1": jnp.zeros((1, hid), jnp.float32),
            "W2": xavier(next(keys), (hid, org)),
            "b2": jnp.zeros((1, org), jnp.float32),
        })
        d_in = hid
    return params


# ----------------------------------------------------------------------------
# STARBlock forward (glue in plain JAX, hot path in Pallas kernels)
# ----------------------------------------------------------------------------
def star_block_forward(params, adj_prep, ufeats, ifeats, *, row_tile=512):
    """adj_prep: output of prepare_adjacency (padded + narrow-dtype, reusable).

    Returns (ufeats_h, ifeats_h, ufeats_r, ifeats_r) exactly like STARBlock.
    """
    adj_p = adj_prep["adj_p"]
    nU, nI = adj_prep["n_users"], adj_prep["n_items"]
    nU_p, nI_p = adj_prep["n_users_pad"], adj_prep["n_items_pad"]
    TU, TI = adj_prep["tile_users"], adj_prep["tile_items"]

    # Pad feature rows/cols once; padded rows/cols stay exactly zero through
    # all GCMC layers (zero adjacency padding, leaky(0)=0) so no per-layer
    # slice / re-pad relayouts are needed.
    u = _pad2(ufeats, nU_p, _round_up(ufeats.shape[1], LANE))
    i = _pad2(ifeats, nI_p, _round_up(ifeats.shape[1], LANE))

    # ---- GCMCEncoder: n_layers_en GCMC layers, then shared W_h linear ------
    for layer in params["enc_layers"]:
        xw_i = xw_per_type(i, layer["W_item"], tile_src=TI)
        xw_u = xw_per_type(u, layer["W_user"], tile_src=TU)
        u = gcmc_aggregate_users(adj_p, xw_i, tm_u=TU, tk_i=TI)
        i = gcmc_aggregate_items(adj_p, xw_u, tm_i=TI, tk_u=TU)

    # Single W_h projection on the concatenated (still padded) features.
    feats = jnp.concatenate([u, i], axis=0)            # (nU_p + nI_p, d_hid_p)
    feats_h = linear(feats, params["W_h"], params["b_h"], row_tile=row_tile)
    ufeats_h = feats_h[:nU]
    ifeats_h = feats_h[nU_p:nU_p + nI]

    # ---- ReconstructionDecoder: fused (W1 -> leaky -> W2) per layer --------
    rec = feats_h
    for layer in params["dec_layers"]:
        rec = decoder_layer(rec, layer["W1"], layer["b1"],
                            layer["W2"], layer["b2"], row_tile=row_tile)
    return ufeats_h, ifeats_h, rec[:nU], rec[nU_p:nU_p + nI]


# ----------------------------------------------------------------------------
# Pure-JAX reference (mirrors the bf16 operand casts; f32 accumulation)
# ----------------------------------------------------------------------------
def _leaky(x):
    return jnp.where(x >= 0, x, LEAKY_SLOPE * x)


def reference_forward(params, adj_ui, ufeats, ifeats):
    cdt = COMPUTE_DTYPE

    def mm(a, b):
        return jnp.dot(a.astype(cdt), b.astype(cdt),
                       preferred_element_type=jnp.float32)

    R = adj_ui.shape[0]
    adj = adj_ui.astype(cdt)
    u, i = ufeats, ifeats
    for layer in params["enc_layers"]:
        xw_i = [mm(i, layer["W_item"][r]).astype(cdt) for r in range(R)]
        xw_u = [mm(u, layer["W_user"][r]).astype(cdt) for r in range(R)]
        new_u = _leaky(sum(jnp.dot(adj[r], xw_i[r],
                                   preferred_element_type=jnp.float32)
                           for r in range(R)))
        new_i = _leaky(sum(jnp.dot(adj[r].T, xw_u[r],
                                   preferred_element_type=jnp.float32)
                           for r in range(R)))
        u, i = new_u, new_i
    uh = mm(u, params["W_h"]) + params["b_h"]
    ih = mm(i, params["W_h"]) + params["b_h"]
    n_users = uh.shape[0]
    feats = jnp.concatenate([uh, ih], axis=0)
    for layer in params["dec_layers"]:
        h = _leaky(mm(feats, layer["W1"]) + layer["b1"])
        feats = mm(h, layer["W2"]) + layer["b2"]
    return uh, ih, feats[:n_users], feats[n_users:]


# ----------------------------------------------------------------------------
if __name__ == "__main__":
    # Small but multi-tile shapes (row_tile=128 so the tiled / parallel /
    # reduction code paths are exercised; production default is 512).
    n_users, n_items = 192, 256
    in_feats_dim, hidden_feats_dim, out_feats_dim = 16, 32, 24
    n_layers_en, n_layers_de = 2, 2
    edge_types = [1, 2, 3]
    R = len(edge_types)
    row_tile = 128

    key = jax.random.PRNGKey(0)
    k_adj, k_u, k_i, k_par = jax.random.split(key, 4)

    adj_ui = jax.random.bernoulli(k_adj, 0.3, (R, n_users, n_items)).astype(jnp.float32)
    ufeats = jax.random.normal(k_u, (n_users, in_feats_dim), jnp.float32)
    ifeats = jax.random.normal(k_i, (n_items, in_feats_dim), jnp.float32)

    params = build_params(
        k_par,
        n_layers_en=n_layers_en, n_layers_de=n_layers_de, n_edge_types=R,
        in_feats_dim=in_feats_dim, hidden_feats_dim=hidden_feats_dim,
        out_feats_dim=out_feats_dim,
    )

    # Adjacency pad/cast hoisted: done once, reused by every forward call.
    adj_prep = prepare_adjacency(adj_ui, row_tile=row_tile)

    outs = star_block_forward(params, adj_prep, ufeats, ifeats, row_tile=row_tile)
    outs = jax.block_until_ready(outs)

    refs = reference_forward(params, adj_ui, ufeats, ifeats)
    for o, r in zip(outs, refs):
        assert o.shape == r.shape, (o.shape, r.shape)
        assert jnp.allclose(o, r, atol=2e-2, rtol=2e-2), float(jnp.max(jnp.abs(o - r)))

    print("KERNEL_OK")
</pallas_src>

<mosaic_0001>
module attributes {stable_mosaic.version = 11 : i64} {
  func.func @_xw_kernel(%arg0: i32, %arg1: i32, %arg2: memref<128x128xf32, #tpu.memory_space<vmem>>, %arg3: memref<1x128x128xbf16, #tpu.memory_space<vmem>>, %arg4: memref<1x128x128xbf16, #tpu.memory_space<vmem>>) attributes {dimension_semantics = [#tpu.dimension_semantics<parallel>, #tpu.dimension_semantics<parallel>], iteration_bounds = array<i64: 2, 3>, scalar_prefetch = 0 : i64, scratch_operands = 0 : i64, tpu.core_type = #tpu.core_type<tc>, window_params = [{transform_indices = @transform_0, window_bounds = array<i64: 128, 128>}, {transform_indices = @transform_1, window_bounds = array<i64: 1, 128, 128>}, {transform_indices = @transform_2, window_bounds = array<i64: 1, 128, 128>}]} {
    %c0 = arith.constant 0 : index
    %c0_0 = arith.constant 0 : index
    %0 = vector.load %arg2[%c0, %c0_0] : memref<128x128xf32, #tpu.memory_space<vmem>>, vector<128x128xf32>
    %1 = arith.truncf %0 : vector<128x128xf32> to vector<128x128xbf16>
    %c0_1 = arith.constant 0 : index
    %c0_2 = arith.constant 0 : index
    %c0_3 = arith.constant 0 : index
    %2 = vector.load %arg3[%c0_1, %c0_2, %c0_3] : memref<1x128x128xbf16, #tpu.memory_space<vmem>>, vector<1x128x128xbf16>
    %3 = vector.shape_cast %2 : vector<1x128x128xbf16> to vector<128x128xbf16>
    %cst = arith.constant dense<0.000000e+00> : vector<128x128xf32>
    %4 = tpu.matmul %1, %3, %cst {dimension_numbers = #tpu.dot_dimension_numbers<[1], [0], [0], [1], [0, 0, 1, 1], [], []>} : vector<128x128xbf16>, vector<128x128xbf16>, vector<128x128xf32> -> vector<128x128xf32>
    %5 = arith.truncf %4 : vector<128x128xf32> to vector<128x128xbf16>
    %c0_4 = arith.constant 0 : index
    %c0_5 = arith.constant 0 : index
    %c0_6 = arith.constant 0 : index
    %6 = vector.load %arg4[%c0_4, %c0_5, %c0_6] : memref<1x128x128xbf16, #tpu.memory_space<vmem>>, vector<1x128x128xbf16>
    %7 = vector.shape_cast %6 : vector<1x128x128xbf16> to vector<128x128xbf16>
    %8 = vector.shape_cast %5 : vector<128x128xbf16> to vector<1x128x128xbf16>
    tpu.vector_store %arg4[%c0_4, %c0_5, %c0_6], %8 {strides = array<i32>} : memref<1x128x128xbf16, #tpu.memory_space<vmem>>, vector<1x128x128xbf16>,
    return
  }
  func.func @transform_0(%arg0: i32, %arg1: i32) -> (i32, i32) {
    %c0_i32 = arith.constant 0 : i32
    %c0_i32_0 = arith.constant 0 : i32
    return %arg0, %c0_i32 : i32, i32
  }
  func.func @transform_1(%arg0: i32, %arg1: i32) -> (i32, i32, i32) {
    %c0_i32 = arith.constant 0 : i32
    %c0_i32_0 = arith.constant 0 : i32
    %c0_i32_1 = arith.constant 0 : i32
    return %arg1, %c0_i32, %c0_i32_0 : i32, i32, i32
  }
  func.func @transform_2(%arg0: i32, %arg1: i32) -> (i32, i32, i32) {
    %c0_i32 = arith.constant 0 : i32
    %c0_i32_0 = arith.constant 0 : i32
    return %arg1, %arg0, %c0_i32 : i32, i32, i32
  }
}

</mosaic_0001>

<bundles_post_ra>
// kernel: tpu_custom_call.1
= control target key start
LH: loop header
LB: loop body
LE: loop exit
PB: predicated region body
PF: predicated region fallthrough
CT: control target
= control target key end

     0   :  { %s1473_s0 = inlined_call_operand.hbm [shape: f32[256,128], index: 0, kind: input, shape index: {}]   ;;  %s1474_s1 = inlined_call_operand.hbm [shape: bf16[3,128,128], index: 1, kind: input, shape index: {}]   ;;  %s1475_s2 = inlined_call_operand.hbm [shape: bf16[3,256,128], index: 2, kind: output, shape index: {}]  }
   0x1   :  { %1483 = sst [smem:[#allocation17_spill]] %s1473_s0 }
   0x2   :  { %1484 = sst [smem:[#allocation18_spill]] %s1475_s2 }
   0x3   :  { %7 = vsyncpa [#allocation3], 0 }
   0x4   :  { %9 = vsyncpa [#allocation3 + $0x1], 0 }
   0x5   :  { %10 = vsyncpa [#allocation6], 0 }
   0x6   :  { %12 = vsyncpa [#allocation6 + $0x1], 0 }
   0x7   :  { %13 = vsyncpa [#allocation4], 0 }
   0x8   :  { %15 = vsyncpa [#allocation4 + $0x1], 0  ;;  %s1158_s9 = smov 0   ;;  %s1160_s10 = smov 0  }
   0x9   :  { %s1162_s11 = smov 0   ;;  %s1164_s12 = smov 0  }
   0xa   :  { %s1166_s13 = smov 0   ;;  %s1168_s14 = smov 0  }
   0xb   :  { %s1170_s15 = smov 0   ;;  %s1172_s16 = smov 0  }
   0xc   :  { %s1174_s17 = smov 0   ;;  %s1176_s18 = smov 0  }
   0xd   :  { %s1178_s19 = smov 0   ;;  %s1180_s20 = smov 0  }
   0xe   :  { %s1182_s21 = smov 0   ;;  %s1184_s22 = smov 0  }
   0xf LB: > { %1485 = sst [smem:[#allocation11_spill]] %s1116_s18  ;;  %s610_s23 = sadd.s32 4294967295, %s1132_s22   ;;  %s1132_s22 = sphi %s1184_s22, %s21_s22   ;;  %s1128_s21 = sphi %s1182_s21, %s1513_s21   ;;  %s1124_s20 = sphi %s1180_s20, %s1525_s20   ;;  %s1120_s19 = sphi %s1178_s19, %s1511_s19   ;;  %s1116_s18 = sphi %s1176_s18, %s1524_s18   ;;  %s1112_s17 = sphi %s1174_s17, %s1523_s17   ;;  %s1108_s16 = sphi %s1172_s16, %s1522_s16   ;;  %s1104_s15 = sphi %s1170_s15, %s1521_s15   ;;  %s1100_s14 = sphi %s1168_s14, %s1520_s14   ;;  %s1096_s13 = sphi %s1166_s13, %s1519_s13   ;;  %s1092_s12 = sphi %s1164_s12, %s1518_s12   ;;  %s1088_s11 = sphi %s1162_s11, %s1517_s11   ;;  %s1084_s10 = sphi %s1160_s10, %s1516_s10   ;;  %s1080_s9 = sphi %s1158_s9, %s1515_s9  }
  0x10   : > { %1486 = sst [smem:[#allocation12_spill]] %s1128_s21  ;;  %p47_p0 = scmp.ne.s32.totalorder %s1112_s17, %s1108_s16 }
  0x11   : > { %p48_p1 = scmp.eq.s32.totalorder %s1132_s22, 0  ;;  %p53_p2 = scmp.ne.s32.totalorder %s1108_s16, %s1104_s15 }
  0x12   : > { %p1233_p3 = scmp.eq.s32.totalorder %s610_s23, 0  ;;  %p1237_p4 = scmp.eq.s32.totalorder %s610_s23, 5 }
  0x13   : > { %p49_p5 = por %p48_p1, %p47_p0  ;;  %p800_p7 = scmp.lt.s32.totalorder %s1132_s22, 6 }
  0x14   : > { %p1245_p6 = por %p1233_p3, %p53_p2  ;;  %s131_s29 = sand.u32 1, %s1112_s17  }
  0x15   : > { %s654_s30 = sshll.u32 %s1128_s21, 11  ;;  %s614_s3 = sshll.u32 %s131_s29, 7 }
  0x16   : > { %s1490_s0 = sld [smem:[#allocation17_spill]]  ;;  %s135_s7 = scalar_lea.vmem [#allocation2], %s614_s3 }
  0x17   : > { %s142_s8 = sshll.u32 %s135_s7, 4  ;;  %p1257_p8 = pnand %p800_p7, %p49_p5  ;;  %s143_s8 = int_to_ptr.vmem [resolvable:$true] %s142_s8 }
  0x18   : > { %s132_s23 = scalar_lea.sflag [#allocation3], %s131_s29  ;;  %s941_s25 = scalar_lea.vmem %s143_s8, 2048 }
  0x19   : > { %p930_p9 = pneg %p1257_p8  ;;  %p942_p10 = scmp.ne.s32.totalorder %s143_s8, %s941_s25 }
  0x1a   : > { %s1134_s24 = smov [#allocation2]  }
  0x1b   : > { %p944_p11 = pnand %p942_p10, %p930_p9  ;;  %s946_s2 = sshll.u32 %s1134_s24, 4  ;;  %s947_s2 = int_to_ptr.vmem [resolvable:$false] %s946_s2 }
  0x1c   : > { %s141_s6 = scalar_lea.hbm %s1490_s0, %s654_s30  ;;  %s948_s30 = scalar_lea.vmem %s947_s2, 4096 }
  0x1d   : > { %p945_p12 = pneg %p944_p11  ;;  %p949_p13 = scmp.lt.s32.totalorder %s143_s8, %s947_s2 }
  0x1e   : > { %p950_p0 = scmp.lt.s32.totalorder %s948_s30, %s941_s25 }
  0x20   : > { %p951_p2 = por %p950_p0, %p949_p13 }
  0x22   : > { %p952_p5 = pnand %p951_p2, %p945_p12 }
  0x24   : > { %955 = shalt.err (!%p952_p5)
}
  0x25   : > { %s1135_s3 = smov 128   ;;  %s1136_s2 = smov 8  }
  0x26   : > { %792 = dma.hbm_to_vmem [thread:$0]  (!%p1257_p8), %s141_s6, 2048, %s143_s8, %s132_s23, %s1135_s3, %s1135_s3, %s1136_s2  }
  0x27   : > { %p620_p9 = scmp.ge.s32.totalorder %s1132_s22, 1  ;;  %p171_p10 = scmp.lt.s32.totalorder %s1132_s22, 7 }
  0x28   : > { %s611_s25 = sadd.s32 4294967294, %s1132_s22   ;;  %s30_s29 = sadd.s32 1, %s1124_s20 }
  0x29   : > { %p1267_p11 = pnand %p620_p9, %p171_p10  ;;  %s66_s4 = sadd.s32 1, %s1100_s14 }
  0x2a   : > { %p31_p12 = scmp.ge.s32.totalorder %s30_s29, 3  ;;  %p73_p13 = scmp.ne.s32.totalorder %s1100_s14, %s1096_s13 }
  0x2b   : > { %p79_p0 = scmp.ne.s32.totalorder %s1096_s13, %s1092_s12  ;;  %s94_s5 = sadd.s32 1, %s1088_s11 }
  0x2c   : > { %s1527_s29 = smov (%p31_p12, %s30_s29), 0  ;;  %s1494_s6 = sadd.s32 1, %s1128_s21 }
  0x2d   : > { %1493 = sst [smem:[#allocation13_spill]] %s1527_s29  ;;  %s1529_s6 = smov (!%p31_p12, %s1494_s6), %s1128_s21 }
  0x2e   : > { %s63_s7 = ssub.s32 %s1124_s20, %s1527_s29  ;;  %p1288_p8 = por %p73_p13, %p48_p1 }
  0x2f   : > { %p35_p2 = scmp.ge.s32.totalorder %s1529_s6, 2  ;;  %p64_p5 = scmp.eq.s32.totalorder %s63_s7, 0 }
  0x30   : > { %p1294_p9 = por %p79_p0, %p1233_p3  ;;  %p104_p10 = scmp.ne.s32.totalorder %s1088_s11, %s1084_s10 }
  0x31   : > { %s1531_s6 = smov (%p35_p2, %s1529_s6), 0  ;;  %p110_p13 = scmp.ne.s32.totalorder %s1084_s10, %s1080_s9 }
  0x32   : > { %1497 = sst [smem:[#allocation14_spill]] %s1531_s6  ;;  %s37_s23 = ssub.s32 %s1128_s21, %s1531_s6 }
  0x33   : > { %s1303_s15 = scalar_select %p64_p5, %s1100_s14, %s66_s4  }
  0x34   : > { %p1309_p1 = por %p1237_p4, %p104_p10  ;;  %p38_p12 = scmp.eq.s32.totalorder %s37_s23, 0 }
  0x35   : > { %1498 = sst [smem:[#allocation15_spill]] %s1303_s15  ;;  %s91_s26 = sor.u32 %s63_s7, %s37_s23 }
  0x36   : > { %s1499_s30 = scalar_select %p1309_p1, 1, 0 }
  0x37   : > { %p92_p3 = scmp.eq.s32.totalorder %s91_s26, 0  ;;  %s1501_s3 = sadd.s32 1, %s1112_s17 }
  0x38   : > { %1500 = sst [smem:[#allocation16_spill]] %s1499_s30  ;;  %p111_p0 = scmp.eq.s32.totalorder %s611_s25, 5 }
  0x39   : > { %s1318_s2 = scalar_select %p38_p12, %s1112_s17, %s1501_s3  }
  0x3a   : > { %s1321_s0 = scalar_select %p92_p3, %s1088_s11, %s94_s5  }
  0x3b   : > { %s152_s4 = sand.u32 1, %s1100_s14   ;;  %p1324_p2 = por %p111_p0, %p110_p13 }
  0x3c   : > { %s617_s29 = sshll.u32 %s152_s4, 6  ;;  %s655_s6 = sshll.u32 %s1124_s20, 10 }
  0x3d   : > { %s1502_s27 = scalar_select %p1324_p2, 1, 0 }
  0x3e   : > { %s156_s21 = scalar_lea.vmem [#allocation5], %s617_s29  ;;  %s162_s7 = scalar_lea.hbm %s1474_s1, %s655_s6 }
  0x3f   : > { %s163_s15 = sshll.u32 %s156_s21, 4  ;;  %p1336_p4 = pnand %p800_p7, %p1288_p8  ;;  %s164_s15 = int_to_ptr.vmem [resolvable:$true] %s163_s15 }
  0x40   : > { %s153_s25 = scalar_lea.sflag [#allocation6], %s152_s4  ;;  %s969_s23 = scalar_lea.vmem %s164_s15, 1024 }
  0x41   : > { %p958_p5 = pneg %p1336_p4  ;;  %p970_p10 = scmp.ne.s32.totalorder %s164_s15, %s969_s23 }
  0x42   : > { %s1137_s21 = smov [#allocation5]  }
  0x43   : > { %p972_p12 = pnand %p970_p10, %p958_p5  ;;  %s974_s29 = sshll.u32 %s1137_s21, 4  ;;  %s975_s29 = int_to_ptr.vmem [resolvable:$false] %s974_s29 }
  0x44   : > { %s976_s18 = scalar_lea.vmem %s975_s29, 2048  ;;  %p977_p13 = scmp.lt.s32.totalorder %s164_s15, %s975_s29 }
  0x45   : > { %p973_p3 = pneg %p972_p12  ;;  %p978_p0 = scmp.lt.s32.totalorder %s976_s18, %s969_s23 }
  0x47   : > { %p979_p2 = por %p978_p0, %p977_p13 }
  0x49   : > { %p980_p1 = pnand %p979_p2, %p973_p3 }
  0x4b   : > { %983 = shalt.err (!%p980_p1)
}
  0x4c   : > { %s1138_s6 = smov 64   ;;  %s1139_s8 = smov 4  }
  0x4d   : > { %795 = dma.hbm_to_vmem [thread:$0]  (!%p1336_p4), %s162_s7, 1024, %s164_s15, %s153_s25, %s1138_s6, %s1138_s6, %s1139_s8  }
  0x4e   : > { %175 = sbr.rel (%p1267_p11) target bundleno = 344 (0x158), region = 28  ;;  %s177_s30 = sand.u32 (!%p1267_p11), 1, %s1108_s16  }
  0x4f   : > { %s621_s26 = sshll.u32 (!%p1267_p11), %s177_s30, 7  ;;  %s178_s3 = scalar_lea.sflag (!%p1267_p11), [#allocation3], %s177_s30 }
  0x50   : > { %s1347_s4 = scalar_lea.vmem (!%p1267_p11), [#allocation2], %s621_s26 }
  0x53   : > { %1067 = dma.done.wait (%p1245_p6), %s178_s3, 2048  }
  0x54   : > { %1069 = vsyncadd (%p1245_p6), %s178_s3, 4294965248  ;;  %s186_s23 = sand.u32 1, %s1096_s13  }
  0x55   : > { %s622_s5 = sshll.u32 %s186_s23, 6  ;;  %s187_s15 = scalar_lea.sflag [#allocation6], %s186_s23 }
  0x56   : > { %s1354_s7 = scalar_lea.vmem [#allocation5], %s622_s5 }
  0x57   : > { %1071 = dma.done.wait (%p1294_p9), %s187_s15, 1024  }
  0x58   : > { %1073 = vsyncadd (%p1294_p9), %s187_s15, 4294966272  ;;  %v920_v0 = vld [vmem:[%s1354_s7 + $0x38] sm:$0xff]   ;;  %v921_v1 = vld [vmem:[%s1354_s7 + $0x30] sm:$0xff]   ;;  %s1504_s28 = sld [smem:[#allocation11_spill]]  ;;  %s213_s24 = sand.u32 1, %s1084_s10  }
  0x59   : > { %735 = vmatprep.subr.bf16.mxu0 %v920_v0  ;;  %767 = vmatprep.subr.bf16.mxu1 %v920_v0  ;;  %v922_v2 = vld [vmem:[%s1354_s7 + $0x28] sm:$0xff]   ;;  %v923_v3 = vld [vmem:[%s1354_s7 + $0x20] sm:$0xff]   ;;  %v924_v10 = vld [vmem:[%s1354_s7 + $0x18] sm:$0xff]   ;;  %s623_s12 = sshll.u32 %s213_s24, 6  ;;  %s649_s25 = sshll.u32 %s1120_s19, 4 }
  0x5a   : > { %736 = vmatpush3.bf16.msra.mxu0 %v920_v0  ;;  %775 = vmatpush3.bf16.msra.mxu1 %v920_v0  ;;  %v219_v4 = vld [vmem:[%s1347_s4] sm:$0xff]  ;;  %v220_v5 = vld [vmem:[%s1347_s4 + $0x8] sm:$0xff]  ;;  %v925_v11 = vld [vmem:[%s1354_s7 + $0x10] sm:$0xff]   ;;  %s215_s29 = scalar_lea.vmem [#allocation7], %s623_s12  ;;  %s1505_s19 = sld [smem:[#allocation16_spill]] }
  0x5b   : > { %737 = vmatprep.subr.bf16.mxu0 %v921_v1  ;;  %768 = vmatprep.subr.bf16.mxu1 %v921_v1  ;;  %v227_v6 = vld [vmem:[%s1347_s4 + $0x40] sm:$0xff]  ;;  %v235_v7 = vpack.c.bf16 %v220_v5, %v219_v4  ;;  %v228_v8 = vld [vmem:[%s1347_s4 + $0x48] sm:$0xff]  ;;  %v221_v14 = vld [vmem:[%s1347_s4 + $0x10] sm:$0xff]  ;;  %s500_s6 = sshll.u32 %s215_s29, 4  ;;  %s1506_s3 = sld [smem:[#allocation18_spill]]  ;;  %s1389_s6 = int_to_ptr.vmem [resolvable:$true] %s500_s6 }
  0x5c   : > { %v239_v9 = vpack.c.bf16 %v228_v8, %v227_v6  ;;  %v926_v12 = vld [vmem:[%s1354_s7 + $0x8] sm:$0xff]   ;;  %v927_v13 = vld [vmem:[%s1354_s7] sm:$0xff]   ;;  %v222_v15 = vld [vmem:[%s1347_s4 + $0x18] sm:$0xff]  ;;  %s1398_s23 = scalar_lea.sflag [#allocation4], %s213_s24  ;;  %s984_s5 = scalar_lea.vmem %s1389_s6, 1024 }
  0x5d   : > { %751 = vmatprep.mubr.bf16.mxu0 %v235_v7  ;;  %v229_v16 = vld [vmem:[%s1347_s4 + $0x50] sm:$0xff]  ;;  %v230_v17 = vld [vmem:[%s1347_s4 + $0x58] sm:$0xff]  ;;  %v223_v18 = vld [vmem:[%s1347_s4 + $0x20] sm:$0xff]  ;;  %v236_v22 = vpack.c.bf16 %v222_v15, %v221_v14  ;;  %p985_p6 = scmp.ne.s32.totalorder %s1389_s6, %s984_s5  ;;  %s1140_s15 = smov [#allocation7]  }
  0x5e   : > { %738 = vmatpush3.bf16.msra.mxu0 %v921_v1  ;;  %776 = vmatpush3.bf16.msra.mxu1 %v921_v1  ;;  %v224_v19 = vld [vmem:[%s1347_s4 + $0x28] sm:$0xff]  ;;  %v231_v20 = vld [vmem:[%s1347_s4 + $0x60] sm:$0xff]  ;;  %v240_v23 = vpack.c.bf16 %v230_v17, %v229_v16  ;;  %v225_v26 = vld [vmem:[%s1347_s4 + $0x30] sm:$0xff]  ;;  %s650_s21 = sshll.u32 %s1504_s28, 5  ;;  %s988_s7 = sshll.u32 %s1140_s15, 4  ;;  %s989_s7 = int_to_ptr.vmem [resolvable:$false] %s988_s7 }
  0x5f   : > { %739 = vmatprep.subr.bf16.mxu0 %v922_v2  ;;  %769 = vmatprep.subr.bf16.mxu1 %v922_v2  ;;  %v232_v21 = vld [vmem:[%s1347_s4 + $0x68] sm:$0xff]  ;;  %v237_v24 = vpack.c.bf16 %v224_v19, %v223_v18  ;;  %v226_v27 = vld [vmem:[%s1347_s4 + $0x38] sm:$0xff]  ;;  %v233_v28 = vld [vmem:[%s1347_s4 + $0x70] sm:$0xff]  ;;  %s497_s18 = sadd.s32 %s650_s21, %s649_s25  ;;  %s990_s28 = scalar_lea.vmem %s989_s7, 2048 }
  0x60   : > { %759 = vmatprep.mubr.bf16.mxu1 %v239_v9  ;;  %v241_v25 = vpack.c.bf16 %v232_v21, %v231_v20  ;;  %v234_v29 = vld [vmem:[%s1347_s4 + $0x78] sm:$0xff]  ;;  %v238_v30 = vpack.c.bf16 %v226_v27, %v225_v26  ;;  %s651_s8 = sshll.u32 %s497_s18, 6  ;;  %p1507_p7 = scmp.ne.s32.totalorder %s1505_s19, 0 }
  0x61   : > { %v242_v31 = vpack.c.bf16 %v234_v29, %v233_v28  ;;  %s1394_s4 = scalar_lea.hbm %s1506_s3, %s651_s8  ;;  %p991_p9 = scmp.lt.s32.totalorder %s1389_s6, %s989_s7 }
  0x62   : > { %740 = vmatpush3.bf16.msra.mxu0 %v922_v2  ;;  %777 = vmatpush3.bf16.msra.mxu1 %v922_v2  ;;  %p986_p11 = pnand %p985_p6, %p1507_p7  ;;  %p992_p1 = scmp.lt.s32.totalorder %s990_s28, %s984_s5 }
  0x63   : > { %741 = vmatprep.subr.bf16.mxu0 %v923_v3  ;;  %770 = vmatprep.subr.bf16.mxu1 %v923_v3 }
  0x64   : > { %p987_p8 = pneg %p986_p11  ;;  %p993_p2 = por %p992_p1, %p991_p9 }
  0x66   : > { %742 = vmatpush3.bf16.msra.mxu0 %v923_v3  ;;  %778 = vmatpush3.bf16.msra.mxu1 %v923_v3  ;;  %p994_p4 = pnand %p993_p2, %p987_p8 }
  0x67   : > { %743 = vmatprep.subr.bf16.mxu0 %v924_v10  ;;  %771 = vmatprep.subr.bf16.mxu1 %v924_v10 }
  0x6a   : > { %744 = vmatpush3.bf16.msra.mxu0 %v924_v10  ;;  %779 = vmatpush3.bf16.msra.mxu1 %v924_v10 }
  0x6b   : > { %745 = vmatprep.subr.bf16.mxu0 %v925_v11  ;;  %772 = vmatprep.subr.bf16.mxu1 %v925_v11 }
  0x6e   : > { %746 = vmatpush3.bf16.msra.mxu0 %v925_v11  ;;  %780 = vmatpush3.bf16.msra.mxu1 %v925_v11 }
  0x6f   : > { %747 = vmatprep.subr.bf16.mxu0 %v926_v12  ;;  %773 = vmatprep.subr.bf16.mxu1 %v926_v12 }
  0x72   : > { %748 = vmatpush3.bf16.msra.mxu0 %v926_v12  ;;  %781 = vmatpush3.bf16.msra.mxu1 %v926_v12 }
  0x73   : > { %749 = vmatprep.subr.bf16.mxu0 %v927_v13  ;;  %774 = vmatprep.subr.bf16.mxu1 %v927_v13 }
  0x76   : > { %750 = vmatpush3.bf16.msra.mxu0 %v927_v13  ;;  %782 = vmatpush3.bf16.msra.mxu1 %v927_v13 }
  0x79   : > { %752 = vmatmul.mubr.bf16.vlgmr.msra.gmra.mxu0 %v236_v22  ;;  %760 = vmatmul.mubr.bf16.vlgmr.msra.gmra.mxu1 %v240_v23 }
  0x7a   : > { %755 = vmatprep.mubr.bf16.mxu0 %v237_v24  ;;  %763 = vmatprep.mubr.bf16.mxu1 %v241_v25 }
  0x81   : > { %756 = vmatmul.mubr.bf16.gmra.mxu0 %v238_v30  ;;  %764 = vmatmul.mubr.bf16.gmra.mxu1 %v242_v31 }
 0x139   : > { %v753_v32 = vpop.f32.mrf.mxu0  ;;  %v761_v33 = vpop.f32.mrf.mxu1 }
 0x13b   : > { %v341_v34 = vpop.f32.mrf.mxu0  ;;  %v373_v35 = vpop.f32.mrf.mxu1 }
 0x13d   : > { %v754_v36 = vpop.f32.mrf.mxu0  ;;  %v762_v37 = vpop.f32.mrf.mxu1 }
 0x13e   : > { %v680_v38 = vpack.c.bf16 %v754_v36, %v753_v32  ;;  %v700_v39 = vpack.c.bf16 %v762_v37, %v761_v33 }
 0x13f   : > { %v344_v40 = vpop.f32.mrf.mxu0  ;;  %v376_v41 = vpop.f32.mrf.mxu1 }
 0x140   : > { %712 = vst [vmem:[%s215_s29 + $0x8] sm:$0xff] %v680_v38   ;;  %716 = vst [vmem:[%s215_s29 + $0x28] sm:$0xff] %v700_v39   ;;  %v675_v42 = vpack.c.bf16 %v344_v40, %v341_v34  ;;  %v695_v43 = vpack.c.bf16 %v376_v41, %v373_v35 }
 0x141   : > { %v757_v44 = vpop.f32.mrf.mxu0  ;;  %v765_v45 = vpop.f32.mrf.mxu1 }
 0x142   : > { %676 = vst [vmem:[%s215_s29] sm:$0xff] %v675_v42   ;;  %715 = vst [vmem:[%s215_s29 + $0x20] sm:$0xff] %v695_v43  }
 0x143   : > { %v357_v46 = vpop.f32.mrf.mxu0  ;;  %v389_v47 = vpop.f32.mrf.mxu1 }
 0x145   : > { %v758_v48 = vpop.f32.mrf.mxu0  ;;  %v766_v49 = vpop.f32.mrf.mxu1 }
 0x146   : > { %v690_v50 = vpack.c.bf16 %v758_v48, %v757_v44  ;;  %v710_v51 = vpack.c.bf16 %v766_v49, %v765_v45 }
 0x147   : > { %v360_v52 = vpop.f32.mrf.mxu0  ;;  %v392_v53 = vpop.f32.mrf.mxu1 }
 0x148   : > { %714 = vst [vmem:[%s215_s29 + $0x18] sm:$0xff] %v690_v50   ;;  %718 = vst [vmem:[%s215_s29 + $0x38] sm:$0xff] %v710_v51   ;;  %v685_v54 = vpack.c.bf16 %v360_v52, %v357_v46  ;;  %v705_v55 = vpack.c.bf16 %v392_v53, %v389_v47 }
 0x14a   : > { %713 = vst [vmem:[%s215_s29 + $0x10] sm:$0xff] %v685_v54   ;;  %717 = vst [vmem:[%s215_s29 + $0x30] sm:$0xff] %v705_v55  }
 0x14b   : > { %997 = shalt.err (!%p994_p4)
}
 0x14c   : > { %s998_s24 = scalar_lea.hbm %s1394_s4, 1024  ;;  %s1002_s21 = scalar_lea.hbm %s1506_s3, 6144 }
 0x14d   : > { %p999_p5 = scmp.ne.s32.totalorder %s1394_s4, %s998_s24  ;;  %p1003_p3 = scmp.lt.s32.totalorder %s1394_s4, %s1506_s3 }
 0x14e   : > { %p1004_p13 = scmp.lt.s32.totalorder %s1002_s21, %s998_s24 }
 0x14f   : > { %p1000_p10 = pnand %p999_p5, %p1507_p7 }
 0x150   : > { %p1005_p0 = por %p1004_p13, %p1003_p3 }
 0x151   : > { %p1001_p12 = pneg %p1000_p10 }
 0x153   : > { %p1006_p6 = pnand %p1005_p0, %p1001_p12 }
 0x155   : > { %1009 = shalt.err (!%p1006_p6)
}
 0x156   : > { %s1141_s8 = smov 64   ;;  %s1142_s30 = smov 4  }
 0x157   : > { %787 = dma.vmem_to_hbm [thread:$0]  (%p1507_p7), %s1389_s6, 1024, %s1394_s4, %s1398_s23, %s1141_s8, %s1141_s8, %s1142_s30  }
 0x158 PF: > { %p801_p11 = scmp.ge.s32.totalorder %s1132_s22, 2  ;;  %s515_s26 = sand.u32 1, %s1080_s9  }
 0x159   : > { %p1508_p8 = scmp.ne.s32.totalorder %s1502_s27, 0  ;;  %s516_s5 = scalar_lea.sflag [#allocation4], %s515_s26 }
 0x15b   : > { %p797_p9 = pnand %p801_p11, %p1508_p8 }
 0x15d   : > { %p798_p1 = pneg %p797_p9 }
 0x15f   : > { %1075 = dma.done.wait (%p798_p1), %s516_s5, 1024  }
 0x160   : > { %1077 = vsyncadd (%p798_p1), %s516_s5, 4294966272  ;;  %s21_s22 = sadd.s32 1, %s1132_s22   ;;  %s1510_s6 = sld [smem:[#allocation15_spill]] }
 0x161   : > { %p1426_p2 = scmp.ge.s32.totalorder %s21_s22, 8   ;;  %s1511_s19 = sld [smem:[#allocation12_spill]] }
 0x162   : > { %s1512_s27 = sld [smem:[#allocation13_spill]]  ;;  %s1515_s9 = smov %s1084_s10 }
 0x163   : > { %s1513_s21 = sld [smem:[#allocation14_spill]]  ;;  %s1516_s10 = smov %s1088_s11 }
 0x164   : > { %s1517_s11 = smov %s1321_s0  ;;  %s1518_s12 = smov %s1096_s13 }
 0x165   : > { %s1519_s13 = smov %s1100_s14  ;;  %s1521_s15 = smov %s1108_s16 }
 0x166   : > { %s1520_s14 = smov %s1510_s6  ;;  %s1522_s16 = smov %s1112_s17 }
 0x167   : > { %s1523_s17 = smov %s1318_s2  ;;  %s1524_s18 = smov %s1124_s20 }
 0x168   : > { %s1525_s20 = smov %s1512_s27  ;;  %20 = sbr.rel (!%p1426_p2) target bundleno = 15 (0xf), region = 86 }
 0x16d   :  { %521 = vsyncpa [#allocation3], 1 }
 0x16e   :  { %523 = vsyncpa [#allocation3 + $0x1], 1 }
 0x16f   :  { %524 = vsyncpa [#allocation6], 1 }
 0x170   :  { %526 = vsyncpa [#allocation6 + $0x1], 1 }
 0x171   :  { %527 = vsyncpa [#allocation4], 1 }
 0x172   :  { %529 = vsyncpa [#allocation4 + $0x1], 1 }

</bundles_post_ra>
